<compile_context>
chip_gen: v7x
topology: tpu7x:2x2x1
jax: 0.10.0
libtpu: 0.0.40
codegen_flags: <defaults>
</compile_context>

<pallas_src>
import jax
import jax.numpy as jnp
from jax import lax
from jax.experimental import pallas as pl
from jax.experimental.pallas import tpu as pltpu


def _vq_kernel(x_ref, eaug_t_ref, e_ref, q_ref, idx_ref, sse_ref):
    xt = x_ref[...]                             # (D, tm) f32, lane-dense
    D, tm = xt.shape
    eaug_t = eaug_t_ref[...]                    # (K, D_aug) f32 (grid-invariant)
    K, D_aug = eaug_t.shape

    # Augment x^T with a constant pad block whose first row is 1.0 so the
    # -0.5*|e_k|^2 bias column of E^T_aug folds into the MXU contraction
    # (removes the per-step (K, tm) VPU subtract and the (K, 1) broadcast).
    pad = (lax.broadcasted_iota(jnp.int32, (D_aug - D, tm), 0) == 0).astype(xt.dtype)
    x_aug = jnp.concatenate([xt, pad], axis=0)  # (D_aug, tm), sublane-aligned

    # scores^T[k, m] = <x_m, e_k> - 0.5*|e_k|^2 ; argmax_k == argmin_k dist.
    scores_t = jnp.dot(eaug_t, x_aug,
                       preferred_element_type=jnp.float32)       # (K, tm) MXU

    # First-occurrence argmax over K (sublane axis) -> lane-dense (1, tm) row.
    iota_k = lax.broadcasted_iota(jnp.int32, (K, tm), 0)          # (K, tm)
    max_vals = jnp.max(scores_t, axis=0, keepdims=True)           # (1, tm)
    idx_row = jnp.min(jnp.where(scores_t == max_vals, iota_k, K),
                      axis=0, keepdims=True)                      # (1, tm) i32
    idx_ref[...] = idx_row

    # Gather the selected codebook columns via E @ one_hot^T (MXU, exact in
    # f32 because exactly one element per column is nonzero).
    one_hot_t = (iota_k == idx_row).astype(jnp.float32)           # (K, tm)
    qt = jnp.dot(e_ref[...], one_hot_t,
                 preferred_element_type=jnp.float32)              # (D, tm)
    q_ref[...] = qt.astype(q_ref.dtype)

    # Lane-dense per-column partial SSE; reduced to a scalar in the wrapper so
    # both grid axes stay embarrassingly parallel (no shared accumulator).
    diff = xt - qt
    sse_ref[...] = jnp.sum(diff * diff, axis=0, keepdims=True)    # (1, tm)


def vector_quantizer_forward(x_nchw, e_i_ts, *, use_ema=False, tm=1024):
    """x_nchw: (B, C, H, W) float32.  e_i_ts: (D, K) codebook with D == C."""
    B, C, H, W = x_nchw.shape
    D, K = e_i_ts.shape
    assert C == D
    assert D % 8 == 0, "TODO(synk): pad feature dim when D is not a multiple of 8"
    HW = H * W

    tm = min(tm, HW)
    assert HW % tm == 0, "TODO(synk): masked tail tile for ragged H*W"
    assert tm % 128 == 0 or tm == HW

    # Free relayout: contiguous NCHW -> (B, D, HW).  Column j of batch b is the
    # spatial position h*W + w, matching x.permute(0,2,3,1).reshape(-1, C)
    # row b*HW + j with features along the other axis.  No HBM transpose.
    x = x_nchw.reshape(B, D, HW).astype(jnp.float32)

    e = e_i_ts.astype(jnp.float32)                         # (D, K)
    D_aug = ((D + 1 + 7) // 8) * 8                         # sublane-aligned D+1
    bias = -0.5 * jnp.sum(e * e, axis=0)                   # (K,)
    eaug_t = jnp.concatenate(
        [e.T, bias[:, None], jnp.zeros((K, D_aug - D - 1), jnp.float32)],
        axis=1)                                            # (K, D_aug), tiny

    grid = (B, HW // tm)

    q, idx_row, sse_partial = pl.pallas_call(
        _vq_kernel,
        out_shape=(
            jax.ShapeDtypeStruct((B, D, HW), jnp.float32),   # quantized (NCHW-flat)
            jax.ShapeDtypeStruct((B, 1, HW), jnp.int32),     # encoding indices
            jax.ShapeDtypeStruct((B, 1, HW), jnp.float32),   # per-column SSE partials
        ),
        grid_spec=pltpu.PrefetchScalarGridSpec(
            num_scalar_prefetch=0,
            grid=grid,
            in_specs=[
                pl.BlockSpec((pl.Squeezed(), D, tm), lambda b, i: (b, 0, i)),
                pl.BlockSpec((K, D_aug), lambda b, i: (0, 0)),   # E^T_aug, grid-invariant
                pl.BlockSpec((D, K), lambda b, i: (0, 0)),       # E, grid-invariant
            ],
            out_specs=[
                pl.BlockSpec((pl.Squeezed(), D, tm), lambda b, i: (b, 0, i)),
                pl.BlockSpec((pl.Squeezed(), 1, tm), lambda b, i: (b, 0, i)),
                pl.BlockSpec((pl.Squeezed(), 1, tm), lambda b, i: (b, 0, i)),
            ],
        ),
        compiler_params=pltpu.CompilerParams(
            # Per-step working set ~1-3 MiB: fits the default scoped-VMEM limit
            # on v5e/v6e/v7x, so no vmem_limit override (re-sweep tm per chip
            # generation before raising it past ~2K).
            dimension_semantics=("parallel", "parallel"),
        ),
    )(x, eaug_t, e)

    quantized_x = q.reshape(B, D, H, W)   # already NCHW; free reshape

    n_elems = jnp.float32(B * C * H * W)
    mse = jnp.sum(sse_partial) / n_elems
    # dictionary_loss = mean((x.detach() - q)^2); commitment = mean((x - q.detach())^2)
    # Forward values are identical; only autodiff paths differ (not modeled here).
    dictionary_loss = None if use_ema else mse
    commitment_loss = mse

    # quantized_x = x + (quantized - x).detach() == quantized (value-wise);
    # the straight-through estimator only affects gradients.
    encoding_indices = idx_row.reshape(B, HW)

    # TODO(synk): EMA codebook update (N_i_ts / m_i_ts buffers) is a
    # training-time stateful side effect, not part of the pure forward path.

    return quantized_x, dictionary_loss, commitment_loss, encoding_indices


if __name__ == "__main__":
    # Small deterministic example consistent with the module:
    #   embedding_dim (C) = 32, num_embeddings (K) = 128, x: (4, 32, 16, 16)
    #   -> HW = 256, grid = (4, 1): exercises pipelining along the batch axis.
    embedding_dim = 32
    num_embeddings = 128
    B, H, W = 4, 16, 16

    key = jax.random.PRNGKey(0)
    kx, ke = jax.random.split(key)

    x = jax.random.normal(kx, (B, embedding_dim, H, W), dtype=jnp.float32)
    limit = 3.0 ** 0.5
    e_i_ts = jax.random.uniform(
        ke, (embedding_dim, num_embeddings),
        minval=-limit, maxval=limit, dtype=jnp.float32)

    quantized_x, dict_loss, commit_loss, indices = vector_quantizer_forward(
        x, e_i_ts, use_ema=False)
    jax.block_until_ready((quantized_x, dict_loss, commit_loss, indices))

    # Sanity checks against a pure-JAX reference of the PyTorch forward.
    flat = jnp.transpose(x, (0, 2, 3, 1)).reshape(-1, embedding_dim)
    d_ref = (jnp.sum(flat ** 2, 1, keepdims=True)
             - 2.0 * flat @ e_i_ts
             + jnp.sum(e_i_ts ** 2, 0, keepdims=True))
    idx_exp = jnp.argmin(d_ref, axis=1).astype(jnp.int32)
    idx_got = indices.reshape(-1)

    # Selected code must attain the minimum distance (identical to index
    # equality except for fp near-ties, which rounding may resolve differently).
    d_min = jnp.min(d_ref, axis=1)
    d_got = jnp.take_along_axis(d_ref, idx_got[:, None], axis=1)[:, 0]
    assert bool(jnp.all((idx_got == idx_exp)
                        | jnp.isclose(d_got, d_min, rtol=1e-5, atol=1e-3)))

    # Quantized output must be exactly the codebook vectors at chosen indices.
    q_sel = jnp.transpose(
        e_i_ts.T[idx_got].reshape(B, H, W, embedding_dim), (0, 3, 1, 2))
    assert jnp.allclose(quantized_x, q_sel, atol=1e-5)

    ref_loss = jnp.mean((x - q_sel) ** 2)
    assert jnp.allclose(commit_loss, ref_loss, rtol=1e-4, atol=1e-5)
    assert jnp.allclose(dict_loss, ref_loss, rtol=1e-4, atol=1e-5)

    print("KERNEL_OK")
</pallas_src>

<mosaic_0001>
module attributes {stable_mosaic.version = 11 : i64} {
  func.func @_vq_kernel(%arg0: i32, %arg1: i32, %arg2: memref<1x32x256xf32, #tpu.memory_space<vmem>>, %arg3: memref<128x40xf32, #tpu.memory_space<vmem>>, %arg4: memref<32x128xf32, #tpu.memory_space<vmem>>, %arg5: memref<1x32x256xf32, #tpu.memory_space<vmem>>, %arg6: memref<1x1x256xi32, #tpu.memory_space<vmem>>, %arg7: memref<1x1x256xf32, #tpu.memory_space<vmem>>) attributes {dimension_semantics = [#tpu.dimension_semantics<parallel>, #tpu.dimension_semantics<parallel>], iteration_bounds = array<i64: 4, 1>, scalar_prefetch = 0 : i64, scratch_operands = 0 : i64, tpu.core_type = #tpu.core_type<tc>, window_params = [{transform_indices = @transform_0, window_bounds = array<i64: 1, 32, 256>}, {pipeline_mode = #tpu.pipeline_mode<synchronous>, transform_indices = @transform_1, window_bounds = array<i64: 128, 40>}, {pipeline_mode = #tpu.pipeline_mode<synchronous>, transform_indices = @transform_2, window_bounds = array<i64: 32, 128>}, {transform_indices = @transform_3, window_bounds = array<i64: 1, 32, 256>}, {transform_indices = @transform_4, window_bounds = array<i64: 1, 1, 256>}, {transform_indices = @transform_5, window_bounds = array<i64: 1, 1, 256>}]} {
    %c0 = arith.constant 0 : index
    %c0_0 = arith.constant 0 : index
    %c0_1 = arith.constant 0 : index
    %0 = vector.load %arg2[%c0, %c0_0, %c0_1] : memref<1x32x256xf32, #tpu.memory_space<vmem>>, vector<1x32x256xf32>
    %1 = vector.shape_cast %0 : vector<1x32x256xf32> to vector<32x256xf32>
    %c0_2 = arith.constant 0 : index
    %c0_3 = arith.constant 0 : index
    %2 = vector.load %arg3[%c0_2, %c0_3] : memref<128x40xf32, #tpu.memory_space<vmem>>, vector<128x40xf32>
    %3 = tpu.iota {dimensions = array<i32: 0>} : vector<8x256xi32>
    %c0_i32 = arith.constant 0 : i32
    %4 = vector.broadcast %c0_i32 : i32 to vector<8x256xi32>
    %5 = arith.cmpi eq, %3, %4 : vector<8x256xi32>
    %6 = arith.extui %5 : vector<8x256xi1> to vector<8x256xi32>
    %7 = arith.sitofp %6 : vector<8x256xi32> to vector<8x256xf32>
    %8 = tpu.concatenate %1, %7 in 0 : vector<32x256xf32>, vector<8x256xf32> -> vector<40x256xf32>
    %cst = arith.constant dense<0.000000e+00> : vector<128x256xf32>
    %9 = tpu.matmul %2, %8, %cst {dimension_numbers = #tpu.dot_dimension_numbers<[1], [0], [0], [1], [0, 0, 1, 1], [], []>} : vector<128x40xf32>, vector<40x256xf32>, vector<128x256xf32> -> vector<128x256xf32>
    %10 = tpu.iota {dimensions = array<i32: 0>} : vector<128x256xi32>
    %cst_4 = arith.constant dense<0xFF800000> : vector<256xf32>
    %11 = vector.multi_reduction <maximumf>, %9, %cst_4 [0] : vector<128x256xf32> to vector<256xf32>
    %12 = vector.shape_cast %11 : vector<256xf32> to vector<1x256xf32>
    %13 = vector.broadcast %12 : vector<1x256xf32> to vector<128x256xf32>
    %14 = arith.cmpf oeq, %9, %13 : vector<128x256xf32>
    %c128_i32 = arith.constant 128 : i32
    %15 = vector.broadcast %c128_i32 : i32 to vector<128x256xi32>
    %16 = arith.select %14, %10, %15 : vector<128x256xi1>, vector<128x256xi32>
    %cst_5 = arith.constant dense<2147483647> : vector<256xi32>
    %17 = vector.multi_reduction <minsi>, %16, %cst_5 [0] : vector<128x256xi32> to vector<256xi32>
    %18 = vector.shape_cast %17 : vector<256xi32> to vector<1x256xi32>
    %c0_6 = arith.constant 0 : index
    %c0_7 = arith.constant 0 : index
    %c0_8 = arith.constant 0 : index
    %19 = vector.load %arg6[%c0_6, %c0_7, %c0_8] : memref<1x1x256xi32, #tpu.memory_space<vmem>>, vector<1x1x256xi32>
    %20 = vector.shape_cast %19 : vector<1x1x256xi32> to vector<1x256xi32>
    %21 = vector.shape_cast %18 : vector<1x256xi32> to vector<1x1x256xi32>
    tpu.vector_store %arg6[%c0_6, %c0_7, %c0_8], %21 {strides = array<i32>} : memref<1x1x256xi32, #tpu.memory_space<vmem>>, vector<1x1x256xi32>,
    %22 = vector.broadcast %18 : vector<1x256xi32> to vector<128x256xi32>
    %23 = arith.cmpi eq, %10, %22 : vector<128x256xi32>
    %24 = arith.extui %23 : vector<128x256xi1> to vector<128x256xi32>
    %25 = arith.sitofp %24 : vector<128x256xi32> to vector<128x256xf32>
    %c0_9 = arith.constant 0 : index
    %c0_10 = arith.constant 0 : index
    %26 = vector.load %arg4[%c0_9, %c0_10] : memref<32x128xf32, #tpu.memory_space<vmem>>, vector<32x128xf32>
    %cst_11 = arith.constant dense<0.000000e+00> : vector<32x256xf32>
    %27 = tpu.matmul %26, %25, %cst_11 {dimension_numbers = #tpu.dot_dimension_numbers<[1], [0], [0], [1], [0, 0, 1, 1], [], []>} : vector<32x128xf32>, vector<128x256xf32>, vector<32x256xf32> -> vector<32x256xf32>
    %c0_12 = arith.constant 0 : index
    %c0_13 = arith.constant 0 : index
    %c0_14 = arith.constant 0 : index
    %28 = vector.load %arg5[%c0_12, %c0_13, %c0_14] : memref<1x32x256xf32, #tpu.memory_space<vmem>>, vector<1x32x256xf32>
    %29 = vector.shape_cast %28 : vector<1x32x256xf32> to vector<32x256xf32>
    %30 = vector.shape_cast %27 : vector<32x256xf32> to vector<1x32x256xf32>
    tpu.vector_store %arg5[%c0_12, %c0_13, %c0_14], %30 {strides = array<i32>} : memref<1x32x256xf32, #tpu.memory_space<vmem>>, vector<1x32x256xf32>,
    %31 = arith.subf %1, %27 : vector<32x256xf32>
    %32 = arith.mulf %31, %31 : vector<32x256xf32>
    %cst_15 = arith.constant dense<0.000000e+00> : vector<256xf32>
    %33 = vector.multi_reduction <add>, %32, %cst_15 [0] : vector<32x256xf32> to vector<256xf32>
    %34 = vector.shape_cast %33 : vector<256xf32> to vector<1x256xf32>
    %c0_16 = arith.constant 0 : index
    %c0_17 = arith.constant 0 : index
    %c0_18 = arith.constant 0 : index
    %35 = vector.load %arg7[%c0_16, %c0_17, %c0_18] : memref<1x1x256xf32, #tpu.memory_space<vmem>>, vector<1x1x256xf32>
    %36 = vector.shape_cast %35 : vector<1x1x256xf32> to vector<1x256xf32>
    %37 = vector.shape_cast %34 : vector<1x256xf32> to vector<1x1x256xf32>
    tpu.vector_store %arg7[%c0_16, %c0_17, %c0_18], %37 {strides = array<i32>} : memref<1x1x256xf32, #tpu.memory_space<vmem>>, vector<1x1x256xf32>,
    return
  }
  func.func @transform_0(%arg0: i32, %arg1: i32) -> (i32, i32, i32) {
    %c0_i32 = arith.constant 0 : i32
    %c0_i32_0 = arith.constant 0 : i32
    return %arg0, %c0_i32, %arg1 : i32, i32, i32
  }
  func.func @transform_1(%arg0: i32, %arg1: i32) -> (i32, i32) {
    %c0_i32 = arith.constant 0 : i32
    %c0_i32_0 = arith.constant 0 : i32
    %c0_i32_1 = arith.constant 0 : i32
    return %c0_i32, %c0_i32_0 : i32, i32
  }
  func.func @transform_2(%arg0: i32, %arg1: i32) -> (i32, i32) {
    %c0_i32 = arith.constant 0 : i32
    %c0_i32_0 = arith.constant 0 : i32
    %c0_i32_1 = arith.constant 0 : i32
    return %c0_i32, %c0_i32_0 : i32, i32
  }
  func.func @transform_3(%arg0: i32, %arg1: i32) -> (i32, i32, i32) {
    %c0_i32 = arith.constant 0 : i32
    %c0_i32_0 = arith.constant 0 : i32
    return %arg0, %c0_i32, %arg1 : i32, i32, i32
  }
  func.func @transform_4(%arg0: i32, %arg1: i32) -> (i32, i32, i32) {
    %c0_i32 = arith.constant 0 : i32
    %c0_i32_0 = arith.constant 0 : i32
    return %arg0, %c0_i32, %arg1 : i32, i32, i32
  }
  func.func @transform_5(%arg0: i32, %arg1: i32) -> (i32, i32, i32) {
    %c0_i32 = arith.constant 0 : i32
    %c0_i32_0 = arith.constant 0 : i32
    return %arg0, %c0_i32, %arg1 : i32, i32, i32
  }
}

</mosaic_0001>

<bundles_post_ra>
// kernel: tpu_custom_call.1
= control target key start
LH: loop header
LB: loop body
LE: loop exit
PB: predicated region body
PF: predicated region fallthrough
CT: control target
= control target key end

     0   :  { %11 = vsyncpa [#allocation3], 0  ;;  %s2483_s0 = inlined_call_operand.hbm [shape: f32[4,32,256], index: 0, kind: input, shape index: {}]   ;;  %s2484_s1 = inlined_call_operand.vmem [shape: f32[128,40], index: 1, kind: input, shape index: {}]   ;;  %s2485_s2 = inlined_call_operand.vmem [shape: f32[32,128], index: 2, kind: input, shape index: {}]   ;;  %s2486_s3 = inlined_call_operand.hbm [shape: f32[4,32,256], index: 3, kind: output, shape index: {0}]   ;;  %s2487_s4 = inlined_call_operand.hbm [shape: s32[4,1,256], index: 4, kind: output, shape index: {1}]   ;;  %s2488_s5 = inlined_call_operand.hbm [shape: f32[4,1,256], index: 5, kind: output, shape index: {2}]  }
   0x1   :  { %13 = vsyncpa [#allocation3 + $0x1], 0 }
   0x2   :  { %14 = vsyncpa [#allocation4], 0 }
   0x3   :  { %16 = vsyncpa [#allocation4 + $0x1], 0 }
   0x4   :  { %17 = vsyncpa [#allocation7], 0 }
   0x5   :  { %19 = vsyncpa [#allocation7 + $0x1], 0  ;;  %s1653_s18 = smov 0   ;;  %s1655_s19 = smov 0  }
   0x6   :  { %s1657_s20 = smov 0   ;;  %s1659_s21 = smov 0  }
   0x7   :  { %s1661_s22 = smov 0   ;;  %s1663_s23 = smov 0  }
   0x8 LB: > { %s1684_s24 = sadd.s32 4294967295, %s1609_s23   ;;  %s2492_s25 = sadd.s32 4294967294, %s1609_s23   ;;  %s1609_s23 = sphi %s1663_s23, %s25_s23   ;;  %s1605_s22 = sphi %s1661_s22, %s2517_s22   ;;  %s1601_s21 = sphi %s1659_s21, %s2516_s21   ;;  %s1597_s20 = sphi %s1657_s20, %s2515_s20   ;;  %s1593_s19 = sphi %s1655_s19, %s2514_s19   ;;  %s1589_s18 = sphi %s1653_s18, %s2513_s18  }
   0x9   : > { %s37_s26 = sadd.s32 1, %s1605_s22  ;;  %s46_s27 = sadd.s32 1, %s1597_s20 }
   0xa   : > { %p39_p0 = scmp.ge.s32.totalorder %s37_s26, 4  ;;  %p53_p1 = scmp.ne.s32.totalorder %s1597_s20, %s1593_s19 }
   0xb   : > { %p54_p2 = scmp.eq.s32.totalorder %s1609_s23, 0  ;;  %p59_p3 = scmp.ne.s32.totalorder %s1593_s19, %s1589_s18 }
   0xc   : > { %s2519_s26 = smov (%p39_p0, %s37_s26), 0  ;;  %p60_p5 = scmp.eq.s32.totalorder %s1684_s24, 0 }
   0xd   : > { %p1696_p4 = por %p54_p2, %p53_p1  ;;  %s41_s29 = ssub.s32 %s1605_s22, %s2519_s26 }
   0xe   : > { %p127_p6 = scmp.eq.s32.totalorder %s1684_s24, 3  ;;  %p44_p7 = scmp.eq.s32.totalorder %s41_s29, 0 }
   0xf   : > { %p1704_p8 = por %p60_p5, %p59_p3  ;;  %p133_p10 = scmp.eq.s32.totalorder %s2492_s25, 3 }
  0x10   : > { %p1708_p9 = por %p127_p6, %p53_p1  ;;  %p1379_p12 = scmp.lt.s32.totalorder %s1609_s23, 4 }
  0x11   : > { %s1715_s7 = scalar_select %p44_p7, %s1597_s20, %s46_s27  }
  0x12   : > { %s2495_s6 = scalar_select %p1708_p9, 1, 0 }
  0x13   : > { %p1717_p11 = por %p133_p10, %p59_p3  ;;  %s215_s9 = sand.u32 1, %s1597_s20  }
  0x14   : > { %s1211_s10 = sshll.u32 %s215_s9, 6  ;;  %s1313_s11 = sshll.u32 %s1605_s22, 10 }
  0x15   : > { %s2496_s8 = scalar_select %p1717_p11, 1, 0 }
  0x16   : > { %s1727_s14 = scalar_lea.hbm %s2483_s0, %s1313_s11  ;;  %s219_s15 = scalar_lea.vmem [#allocation2], %s1211_s10 }
  0x17   : > { %s228_s16 = sshll.u32 %s219_s15, 4  ;;  %p1733_p13 = pnand %p1379_p12, %p1696_p4  ;;  %s1729_s16 = int_to_ptr.vmem [resolvable:$true] %s228_s16 }
  0x18   : > { %s1738_s27 = scalar_lea.sflag [#allocation3], %s215_s9  ;;  %s1437_s29 = scalar_lea.hbm %s1727_s14, 1024 }
  0x19   : > { %p1438_p1 = scmp.ne.s32.totalorder %s1727_s14, %s1437_s29  ;;  %p1439_p2 = pneg %p1733_p13 }
  0x1a   : > { %s1442_s28 = scalar_lea.hbm %s2483_s0, 4096  ;;  %p1443_p4 = scmp.lt.u32.totalorder %s1727_s14, %s2483_s0 }
  0x1b   : > { %p1440_p3 = pnand %p1439_p2, %p1438_p1  ;;  %p1444_p6 = scmp.lt.u32.totalorder %s1442_s28, %s1437_s29 }
  0x1c   : > { %p1446_p10 = scmp.lt.u32.totalorder %s1437_s29, %s1727_s14 }
  0x1d   : > { %p1441_p5 = pneg %p1440_p3  ;;  %p1445_p7 = por %p1444_p6, %p1443_p4 }
  0x1f   : > { %p1447_p12 = por %p1446_p10, %p1445_p7 }
  0x21   : > { %p1448_p0 = pnand %p1447_p12, %p1441_p5 }
  0x23   : > { %1451 = shalt.err (!%p1448_p0)
}
  0x24   : > { %s1452_s9 = scalar_lea.vmem %s1729_s16, 1024  ;;  %s1611_s15 = smov [#allocation2]  }
  0x25   : > { %p1453_p1 = scmp.ne.s32.totalorder %s1729_s16, %s1452_s9  ;;  %s1457_s10 = sshll.u32 %s1611_s15, 4  ;;  %s1458_s10 = int_to_ptr.vmem [resolvable:$false] %s1457_s10 }
  0x26   : > { %s1459_s11 = scalar_lea.vmem %s1458_s10, 2048  ;;  %p1460_p9 = scmp.lt.s32.totalorder %s1729_s16, %s1458_s10 }
  0x27   : > { %p1455_p3 = pnand %p1453_p1, %p1439_p2  ;;  %p1461_p4 = scmp.lt.s32.totalorder %s1459_s11, %s1452_s9 }
  0x29   : > { %p1456_p11 = pneg %p1455_p3  ;;  %p1462_p6 = por %p1461_p4, %p1460_p9 }
  0x2b   : > { %p1463_p7 = pnand %p1462_p6, %p1456_p11 }
  0x2d   : > { %1466 = shalt.err (!%p1463_p7)
}
  0x2e   : > { %s1612_s29 = smov 256   ;;  %s1613_s28 = smov 16  }
  0x2f   : > { %1368 = dma.hbm_to_vmem [thread:$0]  (!%p1733_p13), %s1727_s14, 1024, %s1729_s16, %s1738_s27, %s1612_s29, %s1612_s29, %s1613_s28  }
  0x30   : > { %p236_p0 = scmp.lt.s32.totalorder %s1609_s23, 5  ;;  %p2498_p2 = scmp.ge.s32.totalorder %s1609_s23, 1 }
  0x32   : > { %p237_p5 = pnand %p2498_p2, %p236_p0 }
  0x33   : > { %s1770_s12 = sand.u32 (!%p237_p5), 1, %s1593_s19  }
  0x34   : > { %240 = sbr.rel (%p237_p5) target bundleno = 718 (0x2ce), region = 32  ;;  %s1215_s13 = sshll.u32 (!%p237_p5), %s1770_s12, 6 }
  0x35   : > { %s243_s9 = scalar_lea.sflag (!%p237_p5), [#allocation3], %s1770_s12  ;;  %s246_s15 = scalar_lea.vmem (!%p237_p5), [#allocation2], %s1215_s13 }
  0x3b   : > { %1576 = dma.done.wait (%p1704_p8), %s243_s9, 1024  }
  0x3c   : > { %1578 = vsyncadd (%p1704_p8), %s243_s9, 4294966272  ;;  %v2490_v0 = vmov 0.0   ;;  %v311_v1 = vlaneseq  ;;  %v1782_v2 = vld [vmem:[%s246_s15 + $0x8] sm:$0xff]  ;;  %v1784_v3 = vld [vmem:[%s246_s15 + $0x18] sm:$0xff]  ;;  %v1615_v15 = vmov 1.0   ;;  %vm316_vm1 = vcmask 326656  }
  0x3d   : > { %429 = vmatprep.mubr.f32.mxu0 %v2490_v0  ;;  %909 = vmatprep.mubr.f32.mxu1 %v2490_v0  ;;  %v1786_v4 = vld [vmem:[%s246_s15] sm:$0xff]  ;;  %v1317_v5 = vpack.c.bf16 %v1784_v3, %v1782_v2  ;;  %v1790_v6 = vld [vmem:[%s246_s15 + $0x10] sm:$0xff]  ;;  %v1792_v7 = vld [vmem:[%s246_s15 + $0x28] sm:$0xff]  ;;  %s1000_s9 = sand.u32 1, %s1684_s24   ;;  %s1315_s14 = sshll.u32 %s1601_s21, 5 }
  0x3e   : > { %v1794_v8 = vld [vmem:[%s246_s15 + $0x38] sm:$0xff]  ;;  %v1319_v9 = vpack.c.bf16 %v1790_v6, %v1786_v4  ;;  %v1800_v11 = vld [vmem:[%s246_s15 + $0x20] sm:$0xff]  ;;  %v1802_v12 = vld [vmem:[%s246_s15 + $0x30] sm:$0xff]  ;;  %v1805_v13 = vshrl.u32 %v311_v1, 7  ;;  %s1217_s15 = sshll.u32 %s1770_s12, 1  ;;  %s2352_s27 = scalar_lea.hbm %s2487_s4, %s1315_s14 }
  0x3f   : > { %v1321_v10 = vpack.c.bf16 %v1794_v8, %v1792_v7  ;;  %1318 = vmatprep.subr.bf16.mxu0 %v1317_v5  ;;  %v1323_v14 = vpack.c.bf16 %v1802_v12, %v1800_v11  ;;  %v295_v16 = vld [vmem:[%s2484_s1] sm:$0xff]  ;;  %v296_v17 = vld [vmem:[%s2484_s1 + $0x8] sm:$0xff]  ;;  %v297_v18 = vld [vmem:[%s2484_s1 + $0x10] sm:$0xff]  ;;  %s2278_s30 = scalar_lea.vmem [#allocation6], %s1217_s15  ;;  %s2355_s10 = scalar_lea.sflag [#allocation7], %s1000_s9 }
  0x40   : > { %1320 = vmatpush1.bf16.msra.mxu0 %v1319_v9  ;;  %vm313_vm0 = vcmp.eq.s32.totalorder %v1805_v13, 0  ;;  %v298_v19 = vld [vmem:[%s2484_s1 + $0x18] sm:$0xff]  ;;  %v299_v20 = vld [vmem:[%s2484_s1 + $0x20] sm:$0xff]  ;;  %v300_v21 = vld [vmem:[%s2484_s1 + $0x28] sm:$0xff]  ;;  %s1040_s25 = sshll.u32 %s2278_s30, 4  ;;  %p2510_p9 = scmp.ne.s32.totalorder %s2495_s6, 0  ;;  %s1041_s25 = int_to_ptr.vmem [resolvable:$true] %s1040_s25 }
  0x41   : > { %1322 = vmatprep.subr.bf16.mxu0 %v1321_v10  ;;  %v301_v22 = vld [vmem:[%s2484_s1 + $0x30] sm:$0xff]  ;;  %v302_v23 = vld [vmem:[%s2484_s1 + $0x38] sm:$0xff]  ;;  %v303_v24 = vld [vmem:[%s2484_s1 + $0x40] sm:$0xff]  ;;  %s1467_s11 = scalar_lea.vmem %s1041_s25, 32  ;;  %s1618_s29 = smov [#allocation6]  }
  0x42   : > { %v304_v25 = vld [vmem:[%s2484_s1 + $0x48] sm:$0xff]  ;;  %v305_v26 = vld [vmem:[%s2484_s1 + $0x50] sm:$0xff]  ;;  %v306_v27 = vld [vmem:[%s2484_s1 + $0x58] sm:$0xff]  ;;  %p1468_p8 = scmp.ne.s32.totalorder %s1041_s25, %s1467_s11  ;;  %s1471_s28 = sshll.u32 %s1618_s29, 4  ;;  %s1472_s28 = int_to_ptr.vmem [resolvable:$false] %s1471_s28 }
  0x43   : > { %v307_v28 = vld [vmem:[%s2484_s1 + $0x60] sm:$0xff]  ;;  %v308_v29 = vld [vmem:[%s2484_s1 + $0x68] sm:$0xff]  ;;  %v309_v30 = vld [vmem:[%s2484_s1 + $0x70] sm:$0xff]  ;;  %s1473_s24 = scalar_lea.vmem %s1472_s28, 64  ;;  %p1474_p10 = scmp.lt.s32.totalorder %s1041_s25, %s1472_s28 }
  0x44   : > { %1324 = vmatpush1.bf16.msra.mxu0 %v1323_v14  ;;  %v310_v31 = vld [vmem:[%s2484_s1 + $0x78] sm:$0xff]  ;;  %p1469_p11 = pnand %p1468_p8, %p2510_p9  ;;  %p1475_p12 = scmp.lt.s32.totalorder %s1473_s24, %s1467_s11 }
  0x45   : > { %1220 = vmatprep.subr.msk.mxu0 %vm313_vm0, %v1615_v15 }
  0x46   : > { %p1470_p13 = pneg %p1469_p11  ;;  %p1476_p1 = por %p1475_p12, %p1474_p10 }
  0x48   : > { %1221 = vmatpush1.msk.msra.mxu0 %vm313_vm0, %v1615_v15  ;;  %p1477_p3 = pnand %p1476_p1, %p1470_p13 }
  0x49   : > { %1222 = vmatmul.mubr.msk.f32.vlgmr.msra.gmra.mrb[0].mxu0 %vm316_vm1, %v295_v16 }
  0x4a   : > { %435 = vmatprep.mubr.f32.mxu0 %v2490_v0 }
  0x4d   : > { %1223 = vmatmul.mubr.msk.f32.gmra.mrb[2].mxu0 %vm316_vm1, %v296_v17 }
  0x4e   : > { %441 = vmatprep.mubr.f32.mxu0 %v2490_v0 }
  0x51   : > { %1224 = vmatmul.mubr.msk.f32.gmra.mrb[4].mxu0 %vm316_vm1, %v297_v18 }
  0x52   : > { %447 = vmatprep.mubr.f32.mxu0 %v2490_v0 }
  0x55   : > { %1225 = vmatmul.mubr.msk.f32.gmra.mrb[6].mxu0 %vm316_vm1, %v298_v19 }
  0x56   : > { %453 = vmatprep.mubr.f32.mxu0 %v2490_v0 }
  0x59   : > { %1226 = vmatmul.mubr.msk.f32.gmra.mrb[8].mxu0 %vm316_vm1, %v299_v20 }
  0x5a   : > { %459 = vmatprep.mubr.f32.mxu0 %v2490_v0 }
  0x5d   : > { %1227 = vmatmul.mubr.msk.f32.gmra.mrb[10].mxu0 %vm316_vm1, %v300_v21 }
  0x5e   : > { %465 = vmatprep.mubr.f32.mxu0 %v2490_v0 }
  0x61   : > { %1228 = vmatmul.mubr.msk.f32.gmra.mrb[12].mxu0 %vm316_vm1, %v301_v22 }
  0x62   : > { %471 = vmatprep.mubr.f32.mxu0 %v2490_v0 }
  0x65   : > { %1229 = vmatmul.mubr.msk.f32.gmra.mrb[14].mxu0 %vm316_vm1, %v302_v23 }
  0x66   : > { %477 = vmatprep.mubr.f32.mxu0 %v2490_v0 }
  0x69   : > { %1230 = vmatmul.mubr.msk.f32.gmra.mrb[16].mxu0 %vm316_vm1, %v303_v24 }
  0x6a   : > { %483 = vmatprep.mubr.f32.mxu0 %v2490_v0 }
  0x6d   : > { %1231 = vmatmul.mubr.msk.f32.gmra.mrb[18].mxu0 %vm316_vm1, %v304_v25 }
  0x6e   : > { %489 = vmatprep.mubr.f32.mxu0 %v2490_v0 }
  0x71   : > { %1232 = vmatmul.mubr.msk.f32.gmra.mrb[20].mxu0 %vm316_vm1, %v305_v26 }
  0x72   : > { %495 = vmatprep.mubr.f32.mxu0 %v2490_v0 }
  0x75   : > { %1233 = vmatmul.mubr.msk.f32.gmra.mrb[22].mxu0 %vm316_vm1, %v306_v27 }
  0x76   : > { %501 = vmatprep.mubr.f32.mxu0 %v2490_v0 }
  0x79   : > { %1234 = vmatmul.mubr.msk.f32.gmra.mrb[24].mxu0 %vm316_vm1, %v307_v28 }
  0x7a   : > { %507 = vmatprep.mubr.f32.mxu0 %v2490_v0 }
  0x7d   : > { %1235 = vmatmul.mubr.msk.f32.gmra.mrb[26].mxu0 %vm316_vm1, %v308_v29 }
  0x7e   : > { %513 = vmatprep.mubr.f32.mxu0 %v2490_v0 }
  0x81   : > { %1236 = vmatmul.mubr.msk.f32.gmra.mrb[28].mxu0 %vm316_vm1, %v309_v30 }
  0x82   : > { %519 = vmatprep.mubr.f32.mxu0 %v2490_v0 }
  0x85   : > { %1237 = vmatmul.mubr.msk.f32.gmra.mrb[30].mxu0 %vm316_vm1, %v310_v31 }
 0x11c   : > { %v1889_v32 = vpop.f32.mrb[0].mxu0 }
 0x11d   : > { %v1891_v33 = vpop.f32.mrb[1].mxu0 }
 0x120   : > { %v1893_v34 = vpop.f32.mrb[2].mxu0 }
 0x121   : > { %v1895_v35 = vpop.f32.mrb[3].mxu0 }
 0x124   : > { %v1897_v36 = vpop.f32.mrb[4].mxu0 }
 0x125   : > { %v541_v37 = vmax.f32 %v1889_v32, %v1897_v36  ;;  %v1901_v38 = vpop.f32.mrb[5].mxu0 }
 0x126   : > { %v562_v39 = vmax.f32 %v1891_v33, %v1901_v38 }
 0x128   : > { %v1905_v40 = vpop.f32.mrb[6].mxu0 }
 0x129   : > { %v542_v41 = vmax.f32 %v1893_v34, %v1905_v40  ;;  %v1909_v42 = vpop.f32.mrb[7].mxu0 }
 0x12a   : > { %v563_v43 = vmax.f32 %v1895_v35, %v1909_v42 }
 0x12c   : > { %v1913_v44 = vpop.f32.mrb[8].mxu0 }
 0x12d   : > { %v543_v45 = vmax.f32 %v541_v37, %v1913_v44  ;;  %v1916_v46 = vpop.f32.mrb[9].mxu0 }
 0x12e   : > { %v564_v47 = vmax.f32 %v562_v39, %v1916_v46 }
 0x130   : > { %v1919_v48 = vpop.f32.mrb[10].mxu0 }
 0x131   : > { %v544_v49 = vmax.f32 %v542_v41, %v1919_v48  ;;  %v1922_v50 = vpop.f32.mrb[11].mxu0 }
 0x132   : > { %v565_v51 = vmax.f32 %v563_v43, %v1922_v50 }
 0x134   : > { %v1925_v52 = vpop.f32.mrb[12].mxu0 }
 0x135   : > { %v545_v53 = vmax.f32 %v543_v45, %v1925_v52  ;;  %v1928_v54 = vpop.f32.mrb[13].mxu0 }
 0x136   : > { %v566_v55 = vmax.f32 %v564_v47, %v1928_v54 }
 0x138   : > { %v1931_v56 = vpop.f32.mrb[14].mxu0 }
 0x139   : > { %v546_v57 = vmax.f32 %v544_v49, %v1931_v56  ;;  %v1934_v58 = vpop.f32.mrb[15].mxu0 }
 0x13a   : > { %v567_v59 = vmax.f32 %v565_v51, %v1934_v58 }
 0x13c   : > { %v1937_v60 = vpop.f32.mrb[16].mxu0 }
 0x13d   : > { %v547_v61 = vmax.f32 %v545_v53, %v1937_v60  ;;  %v1940_v62 = vpop.f32.mrb[17].mxu0 }
 0x13e   : > { %v568_v63 = vmax.f32 %v566_v55, %v1940_v62 }
 0x140   : > { %v1943_v5 = vpop.f32.mrb[18].mxu0 }
 0x141   : > { %v548_v9 = vmax.f32 %v546_v57, %v1943_v5  ;;  %v1946_v10 = vpop.f32.mrb[19].mxu0 }
 0x142   : > { %v569_v14 = vmax.f32 %v567_v59, %v1946_v10 }
 0x144   : > { %v1949_v15 = vpop.f32.mrb[20].mxu0 }
 0x145   : > { %v549_v16 = vmax.f32 %v547_v61, %v1949_v15  ;;  %v1952_v17 = vpop.f32.mrb[21].mxu0 }
 0x146   : > { %v570_v18 = vmax.f32 %v568_v63, %v1952_v17 }
 0x148   : > { %v1955_v19 = vpop.f32.mrb[22].mxu0 }
 0x149   : > { %v550_v20 = vmax.f32 %v548_v9, %v1955_v19  ;;  %v1958_v21 = vpop.f32.mrb[23].mxu0 }
 0x14a   : > { %v571_v22 = vmax.f32 %v569_v14, %v1958_v21 }
 0x14c   : > { %v1961_v23 = vpop.f32.mrb[24].mxu0 }
 0x14d   : > { %v551_v24 = vmax.f32 %v549_v16, %v1961_v23  ;;  %v1964_v25 = vpop.f32.mrb[25].mxu0 }
 0x14e   : > { %v572_v26 = vmax.f32 %v570_v18, %v1964_v25  ;;  %v1986_v18 = vadd.s32 8, %v1805_v13 }
 0x150   : > { %v1967_v27 = vpop.f32.mrb[26].mxu0 }
 0x151   : > { %v552_v28 = vmax.f32 %v550_v20, %v1967_v27  ;;  %v1970_v29 = vpop.f32.mrb[27].mxu0  ;;  %v1989_v20 = vadd.s32 16, %v1805_v13 }
 0x152   : > { %v573_v30 = vmax.f32 %v571_v22, %v1970_v29 }
 0x154   : > { %v1973_v31 = vpop.f32.mrb[28].mxu0 }
 0x155   : > { %v553_v37 = vmax.f32 %v551_v24, %v1973_v31  ;;  %v1976_v39 = vpop.f32.mrb[29].mxu0  ;;  %v1992_v24 = vadd.s32 24, %v1805_v13 }
 0x156   : > { %v574_v41 = vmax.f32 %v572_v26, %v1976_v39  ;;  %v1995_v26 = vadd.s32 32, %v1805_v13 }
 0x158   : > { %v1979_v43 = vpop.f32.mrb[30].mxu0 }
 0x159   : > { %v554_v45 = vmax.f32 %v552_v28, %v1979_v43  ;;  %v1982_v47 = vpop.f32.mrb[31].mxu0  ;;  %v1998_v28 = vadd.s32 40, %v1805_v13 }
 0x15a   : > { %v575_v49 = vmax.f32 %v573_v30, %v1982_v47  ;;  %v2001_v30 = vadd.s32 48, %v1805_v13 }
 0x15b   : > { %v555_v51 = vmax.f32 %v553_v37, %v554_v45  ;;  %v2004_v37 = vadd.s32 56, %v1805_v13  ;;  %v2010_v45 = vadd.s32 72, %v1805_v13 }
 0x15c   : > { %v576_v53 = vmax.f32 %v574_v41, %v575_v49  ;;  %v2007_v41 = vadd.s32 64, %v1805_v13 }
 0x15d   : > { %v556_v55 = vrot.slane %v555_v51, 4 }
 0x15e   : > { %v577_v57 = vrot.slane %v576_v53, 4 }
 0x15f   : > { %v557_v59 = vmax.f32 %v555_v51, %v556_v55  ;;  %v2015_v51 = vadd.s32 80, %v1805_v13  ;;  %v2021_v55 = vadd.s32 96, %v1805_v13 }
 0x160   : > { %v578_v61 = vmax.f32 %v576_v53, %v577_v57  ;;  %v2018_v53 = vadd.s32 88, %v1805_v13 }
 0x161   : > { %v558_v63 = vrot.slane %v557_v59, 2 }
 0x162   : > { %v579_v9 = vrot.slane %v578_v61, 2 }
 0x163   : > { %v559_v14 = vmax.f32 %v557_v59, %v558_v63  ;;  %v2056_v59 = vadd.s32 104, %v1805_v13  ;;  %v2062_v63 = vadd.s32 120, %v1805_v13 }
 0x164   : > { %v580_v16 = vmax.f32 %v578_v61, %v579_v9  ;;  %v2059_v61 = vadd.s32 112, %v1805_v13 }
 0x165   : > { %v560_v22 = vrot.slane %v559_v14, 1 }
 0x166   : > { %v581_v57 = vrot.slane %v580_v16, 1 }
 0x167   : > { %v2012_v49 = vmax.f32 %v559_v14, %v560_v22 }
 0x168   : > { %v2064_v9 = vmax.f32 %v580_v16, %v581_v57 }
 0x169   : > { %vm583_vm2 = vcmp.eq.f32.partialorder %v1889_v32, %v2012_v49  ;;  %vm585_vm3 = vcmp.eq.f32.partialorder %v1893_v34, %v2012_v49  ;;  %vm587_vm4 = vcmp.eq.f32.partialorder %v1897_v36, %v2012_v49  ;;  %vm589_vm5 = vcmp.eq.f32.partialorder %v1905_v40, %v2012_v49 }
 0x16a   : > { %vm591_vm6 = vcmp.eq.f32.partialorder %v1913_v44, %v2012_v49  ;;  %vm593_vm7 = vcmp.eq.f32.partialorder %v1919_v48, %v2012_v49  ;;  %vm595_vm8 = vcmp.eq.f32.partialorder %v1925_v52, %v2012_v49  ;;  %vm597_vm9 = vcmp.eq.f32.partialorder %v1931_v56, %v2012_v49 }
 0x16b   : > { %vm599_vm10 = vcmp.eq.f32.partialorder %v1937_v60, %v2012_v49  ;;  %vm601_vm11 = vcmp.eq.f32.partialorder %v1943_v5, %v2012_v49  ;;  %vm603_vm12 = vcmp.eq.f32.partialorder %v1949_v15, %v2012_v49  ;;  %vm605_vm13 = vcmp.eq.f32.partialorder %v1955_v19, %v2012_v49 }
 0x16c   : > { %vm607_vm14 = vcmp.eq.f32.partialorder %v1961_v23, %v2012_v49  ;;  %vm609_vm15 = vcmp.eq.f32.partialorder %v1967_v27, %v2012_v49  ;;  %vm611_vm0 = vcmp.eq.f32.partialorder %v1973_v31, %v2012_v49  ;;  %vm613_vm1 = vcmp.eq.f32.partialorder %v1979_v43, %v2012_v49 }
 0x16d   : > { %v615_v14 = vsel %vm583_vm2, %v1805_v13, 128  ;;  %v617_v22 = vsel %vm585_vm3, %v1986_v18, 128  ;;  %v619_v0 = vsel %vm587_vm4, %v1989_v20, 128  ;;  %v621_v16 = vsel %vm589_vm5, %v1992_v24, 128 }
 0x16e   : > { %v623_v32 = vsel %vm591_vm6, %v1995_v26, 128  ;;  %v625_v34 = vsel %vm593_vm7, %v1998_v28, 128  ;;  %v627_v36 = vsel %vm595_vm8, %v2001_v30, 128  ;;  %v629_v40 = vsel %vm597_vm9, %v2004_v37, 128 }
 0x16f   : > { %v631_v44 = vsel %vm599_vm10, %v2007_v41, 128  ;;  %v633_v48 = vsel %vm601_vm11, %v2010_v45, 128  ;;  %v635_v52 = vsel %vm603_vm12, %v2015_v51, 128  ;;  %v637_v56 = vsel %vm605_vm13, %v2018_v53, 128 }
 0x170   : > { %vm647_vm2 = vcmp.lt.s32.totalorder %v615_v14, %v619_v0  ;;  %vm649_vm3 = vcmp.lt.s32.totalorder %v617_v22, %v621_v16  ;;  %vm584_vm4 = vcmp.eq.f32.partialorder %v1891_v33, %v2064_v9  ;;  %vm586_vm5 = vcmp.eq.f32.partialorder %v1895_v35, %v2064_v9 }
 0x171   : > { %v648_v60 = vsel %vm647_vm2, %v615_v14, %v619_v0  ;;  %v650_v5 = vsel %vm649_vm3, %v617_v22, %v621_v16  ;;  %vm600_vm7 = vcmp.eq.f32.partialorder %v1940_v62, %v2064_v9  ;;  %vm608_vm13 = vcmp.eq.f32.partialorder %v1964_v25, %v2064_v9 }
 0x172   : > { %vm651_vm8 = vcmp.lt.s32.totalorder %v648_v60, %v623_v32  ;;  %vm653_vm9 = vcmp.lt.s32.totalorder %v650_v5, %v625_v34  ;;  %vm610_vm10 = vcmp.eq.f32.partialorder %v1970_v29, %v2064_v9  ;;  %v639_v16 = vsel %vm607_vm14, %v2021_v55, 128 }
 0x173   : > { %v652_v15 = vsel %vm651_vm8, %v648_v60, %v623_v32  ;;  %v654_v19 = vsel %vm653_vm9, %v650_v5, %v625_v34  ;;  %vm606_vm9 = vcmp.eq.f32.partialorder %v1958_v21, %v2064_v9  ;;  %v641_v32 = vsel %vm609_vm15, %v2056_v59, 128 }
 0x174   : > { %vm655_vm2 = vcmp.lt.s32.totalorder %v652_v15, %v627_v36  ;;  %vm657_vm3 = vcmp.lt.s32.totalorder %v654_v19, %v629_v40  ;;  %v616_v27 = vsel %vm584_vm4, %v1805_v13, 128  ;;  %v618_v31 = vsel %vm586_vm5, %v1986_v18, 128 }
 0x175   : > { %v656_v0 = vsel %vm655_vm2, %v652_v15, %v627_v36  ;;  %v658_v57 = vsel %vm657_vm3, %v654_v19, %v629_v40  ;;  %vm612_vm2 = vcmp.eq.f32.partialorder %v1976_v39, %v2064_v9  ;;  %vm614_vm3 = vcmp.eq.f32.partialorder %v1982_v47, %v2064_v9 }
 0x176   : > { %vm659_vm12 = vcmp.lt.s32.totalorder %v656_v0, %v631_v44  ;;  %vm661_vm11 = vcmp.lt.s32.totalorder %v658_v57, %v633_v48  ;;  %v643_v40 = vsel %vm611_vm0, %v2059_v61, 128  ;;  %vm2499_vm0 = vcmp.eq.f32.partialorder %v1901_v38, %v2064_v9 }
 0x177   : > { %v660_v14 = vsel %vm659_vm12, %v656_v0, %v631_v44  ;;  %v662_v22 = vsel %vm661_vm11, %v658_v57, %v633_v48  ;;  %v645_v44 = vsel %vm613_vm1, %v2062_v63, 128  ;;  %v620_v43 = vsel %vm2499_vm0, %v1989_v20, 128 }
 0x178   : > { %vm663_vm8 = vcmp.lt.s32.totalorder %v660_v14, %v635_v52  ;;  %vm665_vm6 = vcmp.lt.s32.totalorder %v662_v22, %v637_v56  ;;  %vm2500_vm1 = vcmp.eq.f32.partialorder %v1909_v42, %v2064_v9  ;;  %vm2501_vm5 = vcmp.eq.f32.partialorder %v1916_v46, %v2064_v9 }
 0x179   : > { %v664_v34 = vsel %vm663_vm8, %v660_v14, %v635_v52  ;;  %v666_v36 = vsel %vm665_vm6, %v662_v22, %v637_v56  ;;  %v622_v49 = vsel %vm2500_vm1, %v1992_v24, 128  ;;  %v624_v35 = vsel %vm2501_vm5, %v1995_v26, 128 }
 0x17a   : > { %vm667_vm11 = vcmp.lt.s32.totalorder %v664_v34, %v639_v16  ;;  %vm669_vm12 = vcmp.lt.s32.totalorder %v666_v36, %v641_v32  ;;  %vm686_vm6 = vcmp.lt.s32.totalorder %v616_v27, %v620_v43  ;;  %vm688_vm8 = vcmp.lt.s32.totalorder %v618_v31, %v622_v49 }
 0x17b   : > { %v668_v23 = vsel %vm667_vm11, %v664_v34, %v639_v16  ;;  %v670_v48 = vsel %vm669_vm12, %v666_v36, %v641_v32  ;;  %vm2502_vm11 = vcmp.eq.f32.partialorder %v1922_v50, %v2064_v9  ;;  %v687_v5 = vsel %vm686_vm6, %v616_v27, %v620_v43 }
 0x17c   : > { %vm671_vm14 = vcmp.lt.s32.totalorder %v668_v23, %v643_v40  ;;  %vm673_vm15 = vcmp.lt.s32.totalorder %v670_v48, %v645_v44  ;;  %v626_v38 = vsel %vm2502_vm11, %v1998_v28, 128  ;;  %v689_v42 = vsel %vm688_vm8, %v618_v31, %v622_v49 }
 0x17d   : > { %v672_v52 = vsel %vm671_vm14, %v668_v23, %v643_v40  ;;  %v674_v33 = vsel %vm673_vm15, %v670_v48, %v645_v44  ;;  %vm2503_vm12 = vcmp.eq.f32.partialorder %v1928_v54, %v2064_v9  ;;  %vm690_vm14 = vcmp.lt.s32.totalorder %v687_v5, %v624_v35 }
 0x17e   : > { %vm675_vm4 = vcmp.lt.s32.totalorder %v672_v52, %v674_v33  ;;  %v628_v15 = vsel %vm2503_vm12, %v2001_v30, 128  ;;  %vm692_vm15 = vcmp.lt.s32.totalorder %v689_v42, %v626_v38  ;;  %vm2504_vm1 = vcmp.eq.f32.partialorder %v1934_v58, %v2064_v9 }
 0x17f   : > { %v676_v56 = vsel %vm675_vm4, %v672_v52, %v674_v33  ;;  %v630_v46 = vsel %vm2504_vm1, %v2004_v37, 128  ;;  %v691_v19 = vsel %vm690_vm14, %v687_v5, %v624_v35  ;;  %v693_v0 = vsel %vm692_vm15, %v689_v42, %v626_v38 }
 0x180   : > { %v677_v60 = vrot.slane %v676_v56, 4  ;;  %vm694_vm4 = vcmp.lt.s32.totalorder %v691_v19, %v628_v15  ;;  %vm696_vm5 = vcmp.lt.s32.totalorder %v693_v0, %v630_v46  ;;  %v632_v50 = vsel %vm600_vm7, %v2007_v41, 128 }
 0x181   : > { %vm2505_vm6 = vcmp.eq.f32.partialorder %v1946_v10, %v2064_v9  ;;  %v695_v14 = vsel %vm694_vm4, %v691_v19, %v628_v15  ;;  %v697_v22 = vsel %vm696_vm5, %v693_v0, %v630_v46  ;;  %vm2506_vm8 = vcmp.eq.f32.partialorder %v1952_v17, %v2064_v9 }
 0x182   : > { %vm678_vm0 = vcmp.lt.s32.totalorder %v676_v56, %v677_v60  ;;  %v634_v54 = vsel %vm2505_vm6, %v2010_v45, 128  ;;  %v636_v58 = vsel %vm2506_vm8, %v2015_v51, 128  ;;  %vm698_vm11 = vcmp.lt.s32.totalorder %v695_v14, %v632_v50 }
 0x183   : > { %v679_v57 = vsel %vm678_vm0, %v676_v56, %v677_v60  ;;  %vm700_vm12 = vcmp.lt.s32.totalorder %v697_v22, %v634_v54  ;;  %v638_v62 = vsel %vm606_vm9, %v2018_v53, 128  ;;  %v699_v32 = vsel %vm698_vm11, %v695_v14, %v632_v50 }
 0x184   : > { %v680_v16 = vrot.slane %v679_v57, 2  ;;  %v701_v34 = vsel %vm700_vm12, %v697_v22, %v634_v54  ;;  %vm702_vm7 = vcmp.lt.s32.totalorder %v699_v32, %v636_v58  ;;  %v640_v10 = vsel %vm608_vm13, %v2021_v55, 128 }
 0x185   : > { %vm704_vm14 = vcmp.lt.s32.totalorder %v701_v34, %v638_v62  ;;  %v642_v17 = vsel %vm610_vm10, %v2056_v59, 128  ;;  %v703_v36 = vsel %vm702_vm7, %v699_v32, %v636_v58  ;;  %v644_v21 = vsel %vm612_vm2, %v2059_v61, 128 }
 0x186   : > { %v705_v40 = vsel %vm704_vm14, %v701_v34, %v638_v62  ;;  %vm706_vm9 = vcmp.lt.s32.totalorder %v703_v36, %v640_v10  ;;  %vm681_vm0 = vcmp.lt.s32.totalorder %v679_v57, %v680_v16  ;;  %v646_v25 = vsel %vm614_vm3, %v2062_v63, 128 }
 0x187   : > { %vm708_vm15 = vcmp.lt.s32.totalorder %v705_v40, %v642_v17  ;;  %v707_v44 = vsel %vm706_vm9, %v703_v36, %v640_v10  ;;  %v682_v27 = vsel %vm681_vm0, %v679_v57, %v680_v16  ;;  %v1616_v33 = vmov 1966171168  }
 0x188   : > { %v709_v23 = vsel %vm708_vm15, %v705_v40, %v642_v17  ;;  %vm710_vm13 = vcmp.lt.s32.totalorder %v707_v44, %v644_v21  ;;  %v683_v39 = vrot.slane %v682_v27, 1  ;;  %v727_v56 = vunpack.c.l.s4 %v1616_v33 }
 0x189   : > { %vm712_vm1 = vcmp.lt.s32.totalorder %v709_v23, %v646_v25  ;;  %v711_v29 = vsel %vm710_vm13, %v707_v44, %v644_v21  ;;  %v1617_v5 = vmov 1.0|1.0  }
 0x18a   : > { %v713_v48 = vsel %vm712_vm1, %v709_v23, %v646_v25  ;;  %vm684_vm4 = vcmp.lt.s32.totalorder %v682_v27, %v683_v39  ;;  %v728_v60 = vunpack.c.0.s8 %v727_v56 }
 0x18b   : > { %vm714_vm10 = vcmp.lt.s32.totalorder %v711_v29, %v713_v48  ;;  %v2226_v9 = vsel %vm684_vm4, %v682_v27, %v683_v39 }
 0x18c   : > { %v715_v31 = vsel %vm714_vm10, %v711_v29, %v713_v48  ;;  %vm745_vm6 = vcmp.eq.s32.totalorder %v1805_v13, %v2226_v9  ;;  %vm747_vm8 = vcmp.eq.s32.totalorder %v1986_v18, %v2226_v9  ;;  %v2244_v42 = vsub.s32 %v728_v60, %v1805_v13 }
 0x18d   : > { %v716_v43 = vrot.slane %v715_v31, 4  ;;  %vm1327_vm15 = vmpackc.low %vm747_vm8, %vm745_vm6  ;;  %vm749_vm13 = vcmp.eq.s32.totalorder %v1989_v20, %v2226_v9  ;;  %vm751_vm1 = vcmp.eq.s32.totalorder %v1992_v24, %v2226_v9  ;;  %vm755_vm6 = vcmp.eq.s32.totalorder %v1998_v28, %v2226_v9 }
 0x18e   : > { %vm1331_vm4 = vmpackc.low %vm751_vm1, %vm749_vm13  ;;  %vm2266_vm8 = vcmp.lt.s32.totalorder %v311_v1, 256  ;;  %v841_v1 = vld [vmem:[%s2485_s2] sm:$0xff] }
 0x18f   : > { %vm717_vm2 = vcmp.lt.s32.totalorder %v715_v31, %v716_v43 }
 0x190   : > { %v718_v49 = vsel %vm717_vm2, %v715_v31, %v716_v43 }
 0x191   : > { %v719_v52 = vrot.slane %v718_v49, 2 }
 0x193   : > { %vm720_vm5 = vcmp.lt.s32.totalorder %v718_v49, %v719_v52 }
 0x194   : > { %v721_v47 = vsel %vm720_vm5, %v718_v49, %v719_v52 }
 0x195   : > { %v722_v35 = vrot.slane %v721_v47, 1 }
 0x197   : > { %vm723_vm3 = vcmp.lt.s32.totalorder %v721_v47, %v722_v35 }
 0x198   : > { %v2228_v38 = vsel %vm723_vm3, %v721_v47, %v722_v35  ;;  %vm753_vm3 = vcmp.eq.s32.totalorder %v1995_v26, %v2226_v9 }
 0x199   : > { %vm746_vm11 = vcmp.eq.s32.totalorder %v1805_v13, %v2228_v38  ;;  %vm748_vm12 = vcmp.eq.s32.totalorder %v1986_v18, %v2228_v38  ;;  %vm750_vm7 = vcmp.eq.s32.totalorder %v1989_v20, %v2228_v38  ;;  %vm752_vm14 = vcmp.eq.s32.totalorder %v1992_v24, %v2228_v38 }
 0x19a   : > { %vm1325_vm9 = vmpackc.low %vm748_vm12, %vm746_vm11  ;;  %vm754_vm10 = vcmp.eq.s32.totalorder %v1995_v26, %v2228_v38  ;;  %vm756_vm2 = vcmp.eq.s32.totalorder %v1998_v28, %v2228_v38  ;;  %v725_v13 = vcombine.low %v2226_v9, %v2228_v38  ;;  %vm758_vm11 = vcmp.eq.s32.totalorder %v2001_v30, %v2228_v38  ;;  %v842_v28 = vld [vmem:[%s2485_s2 + $0x8] sm:$0xff] }
 0x19b   : > { %1326 = vmatprep.subr.msk.bf16.mxu1 %vm1325_vm9, %v1617_v5  ;;  %vm1329_vm0 = vmpackc.low %vm752_vm14, %vm750_vm7  ;;  %vm760_vm12 = vcmp.eq.s32.totalorder %v2004_v37, %v2228_v38  ;;  %vm757_vm9 = vcmp.eq.s32.totalorder %v2001_v30, %v2226_v9  ;;  %vm764_vm13 = vcmp.eq.s32.totalorder %v2010_v45, %v2228_v38  ;;  %v2509_v26 = vmov 0.0   ;;  %v843_v30 = vld [vmem:[%s2485_s2 + $0x10] sm:$0xff] }
 0x19c   : > { %1328 = vmatpush1.bf16.msk.msra.mxu1 %vm1327_vm15, %v1617_v5  ;;  %v732_v18 = vrot.slane %v725_v13, %v2244_v42  ;;  %vm1333_vm5 = vmpackc.low %vm756_vm2, %vm754_vm10  ;;  %vm759_vm15 = vcmp.eq.s32.totalorder %v2004_v37, %v2226_v9  ;;  %vm761_vm2 = vcmp.eq.s32.totalorder %v2007_v41, %v2226_v9  ;;  %v844_v37 = vld [vmem:[%s2485_s2 + $0x18] sm:$0xff] }
 0x19d   : > { %1330 = vmatprep.subr.msk.bf16.mxu1 %vm1329_vm0, %v1617_v5  ;;  %vm1335_vm7 = vmpackc.low %vm755_vm6, %vm753_vm3  ;;  %vm762_vm0 = vcmp.eq.s32.totalorder %v2007_v41, %v2228_v38  ;;  %vm768_vm3 = vcmp.eq.s32.totalorder %v2018_v53, %v2228_v38 }
 0x19e   : > { %v739_v24 = vrot.slane %v732_v18, %v2244_v42  ;;  %vm1337_vm14 = vmpackc.low %vm760_vm12, %vm758_vm11  ;;  %vm765_vm12 = vcmp.eq.s32.totalorder %v2015_v51, %v2226_v9 }
 0x19f   : > { %vm1339_vm1 = vmpackc.low %vm759_vm15, %vm757_vm9  ;;  %vm772_vm9 = vcmp.eq.s32.totalorder %v2056_v59, %v2228_v38 }
 0x1a0   : > { %1332 = vmatpush1.bf16.msk.msra.mxu1 %vm1331_vm4, %v1617_v5  ;;  %744 = vst.msk [vmem:[%s2278_s30] sm:$0x3] %vm2266_vm8, %v739_v24  ;;  %vm1341_vm10 = vmpackc.low %vm764_vm13, %vm762_vm0  ;;  %vm763_vm4 = vcmp.eq.s32.totalorder %v2010_v45, %v2226_v9  ;;  %vm769_vm13 = vcmp.eq.s32.totalorder %v2021_v55, %v2226_v9 }
 0x1a1   : > { %1334 = vmatprep.subr.msk.bf16.mxu1 %vm1333_vm5, %v1617_v5  ;;  %vm766_vm5 = vcmp.eq.s32.totalorder %v2015_v51, %v2228_v38  ;;  %vm1343_vm6 = vmpackc.low %vm763_vm4, %vm761_vm2  ;;  %vm776_vm2 = vcmp.eq.s32.totalorder %v2062_v63, %v2228_v38 }
 0x1a2   : > { %vm1345_vm11 = vmpackc.low %vm768_vm3, %vm766_vm5  ;;  %vm773_vm3 = vcmp.eq.s32.totalorder %v2059_v61, %v2226_v9 }
 0x1a4   : > { %1336 = vmatpush1.bf16.msk.msra.mxu1 %vm1335_vm7, %v1617_v5  ;;  %vm767_vm7 = vcmp.eq.s32.totalorder %v2018_v53, %v2226_v9 }
 0x1a5   : > { %1338 = vmatprep.subr.msk.bf16.mxu1 %vm1337_vm14, %v1617_v5  ;;  %vm770_vm14 = vcmp.eq.s32.totalorder %v2021_v55, %v2228_v38  ;;  %vm1347_vm15 = vmpackc.low %vm767_vm7, %vm765_vm12 }
 0x1a6   : > { %vm1349_vm0 = vmpackc.low %vm772_vm9, %vm770_vm14 }
 0x1a8   : > { %1340 = vmatpush1.bf16.msk.msra.mxu1 %vm1339_vm1, %v1617_v5  ;;  %vm771_vm1 = vcmp.eq.s32.totalorder %v2056_v59, %v2226_v9 }
 0x1a9   : > { %1342 = vmatprep.subr.msk.bf16.mxu1 %vm1341_vm10, %v1617_v5  ;;  %vm774_vm10 = vcmp.eq.s32.totalorder %v2059_v61, %v2228_v38  ;;  %vm1351_vm4 = vmpackc.low %vm771_vm1, %vm769_vm13 }
 0x1aa   : > { %vm1353_vm5 = vmpackc.low %vm776_vm2, %vm774_vm10 }
 0x1ac   : > { %1344 = vmatpush1.bf16.msk.msra.mxu1 %vm1343_vm6, %v1617_v5  ;;  %vm775_vm6 = vcmp.eq.s32.totalorder %v2062_v63, %v2226_v9 }
 0x1ad   : > { %1346 = vmatprep.subr.msk.bf16.mxu1 %vm1345_vm11, %v1617_v5  ;;  %vm1355_vm11 = vmpackc.low %vm775_vm6, %vm773_vm3 }
 0x1b0   : > { %1348 = vmatpush1.bf16.msk.msra.mxu1 %vm1347_vm15, %v1617_v5 }
 0x1b1   : > { %1350 = vmatprep.subr.msk.bf16.mxu1 %vm1349_vm0, %v1617_v5 }
 0x1b4   : > { %1352 = vmatpush1.bf16.msk.msra.mxu1 %vm1351_vm4, %v1617_v5 }
 0x1b5   : > { %1354 = vmatprep.subr.msk.bf16.mxu1 %vm1353_vm5, %v1617_v5 }
 0x1b8   : > { %1356 = vmatpush1.bf16.msk.msra.mxu1 %vm1355_vm11, %v1617_v5 }
 0x1bb   : > { %910 = vmatmul.mubr.f32.vlgmr.msra.gmra.mrb[0].mxu1 %v841_v1 }
 0x1bc   : > { %915 = vmatprep.mubr.f32.mxu1 %v2509_v26 }
 0x1bf   : > { %916 = vmatmul.mubr.f32.gmra.mrb[2].mxu1 %v842_v28 }
 0x1c0   : > { %921 = vmatprep.mubr.f32.mxu1 %v2509_v26 }
 0x1c3   : > { %922 = vmatmul.mubr.f32.gmra.mrb[4].mxu1 %v843_v30 }
 0x1c4   : > { %927 = vmatprep.mubr.f32.mxu1 %v2509_v26 }
 0x1c7   : > { %928 = vmatmul.mubr.f32.gmra.mrb[6].mxu1 %v844_v37 }
 0x1c8   : > { %1480 = shalt.err (!%p1477_p3)
}
 0x1c9   : > { %s1481_s30 = scalar_lea.hbm %s2352_s27, 32  ;;  %s1485_s17 = scalar_lea.hbm %s2487_s4, 128 }
 0x1ca   : > { %p1482_p4 = scmp.ne.s32.totalorder %s2352_s27, %s1481_s30  ;;  %p1486_p0 = scmp.lt.u32.totalorder %s2352_s27, %s2487_s4 }
 0x1cb   : > { %p1487_p2 = scmp.lt.u32.totalorder %s1485_s17, %s1481_s30  ;;  %p1489_p8 = scmp.lt.u32.totalorder %s1481_s30, %s2352_s27 }
 0x1cc   : > { %p1483_p6 = pnand %p1482_p4, %p2510_p9 }
 0x1cd   : > { %p1488_p5 = por %p1487_p2, %p1486_p0 }
 0x1ce   : > { %p1484_p7 = pneg %p1483_p6 }
 0x1cf   : > { %p1490_p11 = por %p1489_p8, %p1488_p5 }
 0x1d1   : > { %p1491_p13 = pnand %p1490_p11, %p1484_p7 }
 0x1d3   : > { %1494 = shalt.err (!%p1491_p13)
}
 0x1d4   : > { %1360 = dma.vmem_to_hbm [thread:$0]  (%p2510_p9), %s1041_s25, 32, %s2352_s27, %s2355_s10  }
 0x1d5   : > { %s2377_s11 = scalar_lea.vmem [#allocation5], %s1215_s13  ;;  %s1314_s13 = sshll.u32 %s1601_s21, 10 }
 0x1d6   : > { %s1021_s25 = sshll.u32 %s2377_s11, 4  ;;  %s2398_s30 = scalar_lea.hbm %s2486_s3, %s1314_s13  ;;  %s2391_s25 = int_to_ptr.vmem [resolvable:$true] %s1021_s25 }
 0x1d7   : > { %s996_s9 = scalar_lea.sflag [#allocation4], %s1770_s12  ;;  %s1495_s16 = scalar_lea.vmem %s2391_s25, 1024 }
 0x1d8   : > { %p1496_p10 = scmp.ne.s32.totalorder %s2391_s25, %s1495_s16  ;;  %s1619_s17 = smov [#allocation5]  }
 0x1d9   : > { %s1499_s29 = sshll.u32 %s1619_s17, 4  ;;  %s1500_s29 = int_to_ptr.vmem [resolvable:$false] %s1499_s29 }
 0x1da   : > { %p1497_p12 = pnand %p1496_p10, %p2510_p9  ;;  %s1501_s28 = scalar_lea.vmem %s1500_s29, 2048 }
 0x1db   : > { %p1502_p3 = scmp.lt.s32.totalorder %s2391_s25, %s1500_s29  ;;  %p1503_p4 = scmp.lt.s32.totalorder %s1501_s28, %s1495_s16 }
 0x1dc   : > { %p1498_p1 = pneg %p1497_p12 }
 0x1dd   : > { %p1504_p6 = por %p1503_p4, %p1502_p3 }
 0x1df   : > { %p1505_p7 = pnand %p1504_p6, %p1498_p1 }
 0x28e   : > { %v911_v41 = vpop.f32.mrb[0].mxu1 }
 0x28f   : > { %934 = vst [vmem:[%s2377_s11] sm:$0xff] %v911_v41  ;;  %v913_v45 = vpop.f32.mrb[1].mxu1  ;;  %v942_v51 = vsub.f32 %v1786_v4, %v911_v41 }
 0x290   : > { %935 = vst [vmem:[%s2377_s11 + $0x8] sm:$0xff] %v913_v45  ;;  %v943_v53 = vsub.f32 %v1782_v2, %v913_v45 }
 0x291   : > { %v950_v15 = vmul.f32 %v942_v51, %v942_v51 }
 0x292   : > { %v917_v55 = vpop.f32.mrb[2].mxu1  ;;  %v951_v19 = vmul.f32 %v943_v53, %v943_v53 }
 0x293   : > { %936 = vst [vmem:[%s2377_s11 + $0x10] sm:$0xff] %v917_v55  ;;  %v944_v59 = vsub.f32 %v1790_v6, %v917_v55  ;;  %v919_v61 = vpop.f32.mrb[3].mxu1 }
 0x294   : > { %937 = vst [vmem:[%s2377_s11 + $0x18] sm:$0xff] %v919_v61  ;;  %v945_v63 = vsub.f32 %v1784_v3, %v919_v61 }
 0x295   : > { %v952_v46 = vmul.f32 %v944_v59, %v944_v59 }
 0x296   : > { %v953_v0 = vmul.f32 %v945_v63, %v945_v63  ;;  %v923_v57 = vpop.f32.mrb[4].mxu1 }
 0x297   : > { %v958_v4 = vadd.f32 %v952_v46, %v950_v15  ;;  %938 = vst [vmem:[%s2377_s11 + $0x20] sm:$0xff] %v923_v57  ;;  %v946_v2 = vsub.f32 %v1800_v11, %v923_v57  ;;  %v925_v50 = vpop.f32.mrb[5].mxu1 }
 0x298   : > { %v967_v6 = vadd.f32 %v953_v0, %v951_v19  ;;  %939 = vst [vmem:[%s2377_s11 + $0x28] sm:$0xff] %v925_v50  ;;  %v947_v3 = vsub.f32 %v1792_v7, %v925_v50 }
 0x299   : > { %v954_v54 = vmul.f32 %v946_v2, %v946_v2 }
 0x29a   : > { %v955_v14 = vmul.f32 %v947_v3, %v947_v3  ;;  %v929_v22 = vpop.f32.mrb[6].mxu1 }
 0x29b   : > { %v959_v11 = vadd.f32 %v958_v4, %v954_v54  ;;  %940 = vst [vmem:[%s2377_s11 + $0x30] sm:$0xff] %v929_v22  ;;  %v948_v58 = vsub.f32 %v1802_v12, %v929_v22  ;;  %v931_v16 = vpop.f32.mrb[7].mxu1 }
 0x29c   : > { %v968_v62 = vadd.f32 %v967_v6, %v955_v14  ;;  %941 = vst [vmem:[%s2377_s11 + $0x38] sm:$0xff] %v931_v16  ;;  %v949_v32 = vsub.f32 %v1794_v8, %v931_v16 }
 0x29d   : > { %v956_v7 = vmul.f32 %v948_v58, %v948_v58 }
 0x29e   : > { %1508 = shalt.err (!%p1505_p7)
}
 0x29f   : > { %s1509_s11 = scalar_lea.hbm %s2398_s30, 1024  ;;  %s1513_s24 = scalar_lea.hbm %s2486_s3, 4096 }
 0x2a0   : > { %p1510_p0 = scmp.ne.s32.totalorder %s2398_s30, %s1509_s11  ;;  %p1514_p8 = scmp.lt.u32.totalorder %s2398_s30, %s2486_s3 }
 0x2a1   : > { %p1515_p11 = scmp.lt.u32.totalorder %s1513_s24, %s1509_s11  ;;  %p1517_p10 = scmp.lt.u32.totalorder %s1509_s11, %s2398_s30 }
 0x2a2   : > { %p1511_p2 = pnand %p1510_p0, %p2510_p9 }
 0x2a3   : > { %p1516_p13 = por %p1515_p11, %p1514_p8 }
 0x2a4   : > { %p1512_p5 = pneg %p1511_p2 }
 0x2a5   : > { %p1518_p12 = por %p1517_p10, %p1516_p13 }
 0x2a7   : > { %p1519_p1 = pnand %p1518_p12, %p1512_p5 }
 0x2a9   : > { %1522 = shalt.err (!%p1519_p1)
}
 0x2aa   : > { %s1620_s16 = smov 256   ;;  %s1621_s28 = smov 16   ;;  %v957_v8 = vmul.f32 %v949_v32, %v949_v32  ;;  %v960_v12 = vadd.f32 %v959_v11, %v956_v7 }
 0x2ab   : > { %1359 = dma.vmem_to_hbm [thread:$0]  (%p2510_p9), %s2391_s25, 1024, %s2398_s30, %s996_s9, %s1620_s16, %s1620_s16, %s1621_s28  }
 0x2ac   : > { %v969_v34 = vadd.f32 %v968_v62, %v957_v8  ;;  %v961_v10 = vrot.slane %v960_v12, 4  ;;  %s282_s25 = scalar_lea.vmem [#allocation8], %s1217_s15  ;;  %s2437_s13 = scalar_lea.hbm %s2488_s5, %s1315_s14 }
 0x2ad   : > { %s1056_s30 = sshll.u32 %s282_s25, 4  ;;  %s1622_s12 = smov [#allocation8]   ;;  %s1057_s30 = int_to_ptr.vmem [resolvable:$true] %s1056_s30 }
 0x2ae   : > { %v970_v17 = vrot.slane %v969_v34, 4  ;;  %v962_v36 = vadd.f32 %v961_v10, %v960_v12  ;;  %s1523_s27 = scalar_lea.vmem %s1057_s30, 32  ;;  %s1527_s15 = sshll.u32 %s1622_s12, 4  ;;  %s1528_s15 = int_to_ptr.vmem [resolvable:$false] %s1527_s15 }
 0x2af   : > { %p1524_p3 = scmp.ne.s32.totalorder %s1057_s30, %s1523_s27  ;;  %s1529_s24 = scalar_lea.vmem %s1528_s15, 64 }
 0x2b0   : > { %v971_v40 = vadd.f32 %v970_v17, %v969_v34  ;;  %v963_v21 = vrot.slane %v962_v36, 2  ;;  %p1530_p7 = scmp.lt.s32.totalorder %s1057_s30, %s1528_s15  ;;  %p1531_p0 = scmp.lt.s32.totalorder %s1529_s24, %s1523_s27 }
 0x2b1   : > { %p1525_p4 = pnand %p1524_p3, %p2510_p9 }
 0x2b2   : > { %v972_v25 = vrot.slane %v971_v40, 2  ;;  %v964_v44 = vadd.f32 %v963_v21, %v962_v36  ;;  %p1532_p2 = por %p1531_p0, %p1530_p7 }
 0x2b3   : > { %p1526_p6 = pneg %p1525_p4 }
 0x2b4   : > { %v973_v23 = vadd.f32 %v972_v25, %v971_v40  ;;  %v965_v29 = vrot.slane %v964_v44, 1 }
 0x2b5   : > { %p1533_p5 = pnand %p1532_p2, %p1526_p6 }
 0x2b6   : > { %v974_v48 = vrot.slane %v973_v23, 1  ;;  %v966_v27 = vadd.f32 %v965_v29, %v964_v44 }
 0x2b8   : > { %v975_v31 = vadd.f32 %v974_v48, %v973_v23 }
 0x2ba   : > { %v978_v43 = vcombine.low %v966_v27, %v975_v31 }
 0x2bc   : > { %v985_v39 = vrot.slane %v978_v43, %v2244_v42 }
 0x2be   : > { %v992_v49 = vrot.slane %v985_v39, %v2244_v42 }
 0x2c0   : > { %994 = vst.msk [vmem:[%s282_s25] sm:$0x3] %vm2266_vm8, %v992_v49 }
 0x2c1   : > { %1536 = shalt.err (!%p1533_p5)
}
 0x2c2   : > { %s1537_s21 = scalar_lea.hbm %s2437_s13, 32  ;;  %s1541_s29 = scalar_lea.hbm %s2488_s5, 128 }
 0x2c3   : > { %p1538_p8 = scmp.ne.s32.totalorder %s2437_s13, %s1537_s21  ;;  %p1542_p10 = scmp.lt.u32.totalorder %s2437_s13, %s2488_s5 }
 0x2c4   : > { %p1543_p12 = scmp.lt.u32.totalorder %s1541_s29, %s1537_s21  ;;  %p1545_p3 = scmp.lt.u32.totalorder %s1537_s21, %s2437_s13 }
 0x2c5   : > { %p1539_p11 = pnand %p1538_p8, %p2510_p9 }
 0x2c6   : > { %p1544_p1 = por %p1543_p12, %p1542_p10 }
 0x2c7   : > { %p1540_p13 = pneg %p1539_p11 }
 0x2c8   : > { %p1546_p4 = por %p1545_p3, %p1544_p1 }
 0x2ca   : > { %p1547_p6 = pnand %p1546_p4, %p1540_p13 }
 0x2cc   : > { %1550 = shalt.err (!%p1547_p6)
}
 0x2cd   : > { %1361 = dma.vmem_to_hbm [thread:$0]  (%p2510_p9), %s1057_s30, 32, %s2437_s13, %s2355_s10  }
 0x2ce PF: > { %p1380_p7 = scmp.ge.s32.totalorder %s1609_s23, 2  ;;  %s1068_s25 = sand.u32 1, %s1589_s18  }
 0x2cf   : > { %p2511_p0 = scmp.ne.s32.totalorder %s2496_s8, 0  ;;  %s1069_s9 = scalar_lea.sflag [#allocation4], %s1068_s25 }
 0x2d1   : > { %p1370_p2 = pnand %p1380_p7, %p2511_p0 }
 0x2d3   : > { %1580 = dma.done.wait (!%p1370_p2), %s1069_s9, 1024  }
 0x2d4   : > { %1582 = vsyncadd (!%p1370_p2), %s1069_s9, 4294966272  ;;  %s2512_s11 = sadd.s32 4294967294, %s1609_s23  }
 0x2d5   : > { %s1077_s27 = sand.u32 1, %s2512_s11  }
 0x2d6   : > { %s1078_s12 = scalar_lea.sflag [#allocation7], %s1077_s27 }
 0x2d7   : > { %1584 = dma.done.wait (!%p1370_p2), %s1078_s12, 64  }
 0x2d8   : > { %1586 = vsyncadd (!%p1370_p2), %s1078_s12, 4294967232  ;;  %s25_s23 = sadd.s32 1, %s1609_s23   ;;  %s2513_s18 = smov %s1593_s19 }
 0x2d9   : > { %p22_p9 = scmp.ge.s32.totalorder %s25_s23, 6   ;;  %s2514_s19 = smov %s1597_s20 }
 0x2da   : > { %s2515_s20 = smov %s1715_s7  ;;  %s2516_s21 = smov %s1605_s22 }
 0x2db   : > { %s2517_s22 = smov %s2519_s26  ;;  %24 = sbr.rel (!%p22_p9) target bundleno = 8 (0x8), region = 109 }
 0x2e2   :  { %1092 = vsyncpa [#allocation3], 1 }
 0x2e3   :  { %1094 = vsyncpa [#allocation3 + $0x1], 1 }
 0x2e4   :  { %1095 = vsyncpa [#allocation4], 1 }
 0x2e5   :  { %1097 = vsyncpa [#allocation4 + $0x1], 1 }
 0x2e6   :  { %1098 = vsyncpa [#allocation7], 1 }
 0x2e7   :  { %1100 = vsyncpa [#allocation7 + $0x1], 1 }

</bundles_post_ra>
